<compile_context>
chip_gen: v5e
topology: v5e:2x2
jax: 0.10.0
libtpu: 0.0.40
codegen_flags: <defaults>
</compile_context>

<pallas_src>
import functools

import jax
import jax.numpy as jnp
from jax.experimental import pallas as pl
from jax.experimental.pallas import tpu as pltpu

MID_1_SIZE = 64
MID_2_SIZE = 32
H1 = 2 * MID_1_SIZE      # fused hidden-1 width (advantage | state) = 128
H2 = 2 * MID_2_SIZE      # fused hidden-2 width                     = 64


def _round_up(n, m):
    return ((n + m - 1) // m) * m


# ---------------------------------------------------------------------------
# Kernel: fused dual-stream MLP for one batch tile (single pass, parallel).
# ---------------------------------------------------------------------------
def _fwd_kernel(x_ref, w1_ref, w2_ref, w3_ref, b1_ref, b2_ref, b3_ref,
                y_ref, *, A):
    """y[:, :A] = val + adv ;  y[:, A] = per-row sum(adv).

    All weight/bias refs are consumed whole (full 128-lane padded blocks);
    accumulation, bias add and ReLU are f32 regardless of weight dtype."""
    w_dtype = w1_ref.dtype

    def dense_relu(h, w_ref, b_ref):
        y = jnp.dot(h.astype(w_dtype), w_ref[...],
                    preferred_element_type=jnp.float32) + b_ref[...]
        return jnp.maximum(y, 0.0)

    x = x_ref[...]                                   # (TB, S)
    h = dense_relu(x, w1_ref, b1_ref)                # (TB, 128) = [adv1 | val1]
    h = dense_relu(h, w2_ref, b2_ref)                # (TB, 128) = [adv2 | val2 | 0]
    h = dense_relu(h, w3_ref, b3_ref)                # (TB, >=128) = [adv | val | 0]

    adv = h[:, 0:A]                                  # (TB, A)
    val = h[:, A:A + 1]                              # (TB, 1)

    y_ref[:, 0:A] = (val + adv).astype(y_ref.dtype)
    y_ref[:, A:A + 1] = jnp.sum(adv, axis=1, keepdims=True).astype(y_ref.dtype)


# ---------------------------------------------------------------------------
# Parameter handling
# ---------------------------------------------------------------------------
def init_params(key, state_size, action_size):
    """Deterministic PyTorch-style (uniform +/- 1/sqrt(fan_in)) init.
    Weights are (in, out), biases (1, out):  y = x @ W + b."""
    def linear(k, fan_in, fan_out):
        kw, kb = jax.random.split(k)
        bound = 1.0 / float(fan_in) ** 0.5
        w = jax.random.uniform(kw, (fan_in, fan_out), jnp.float32, -bound, bound)
        b = jax.random.uniform(kb, (1, fan_out), jnp.float32, -bound, bound)
        return w, b

    keys = jax.random.split(key, 6)
    w1a, b1a = linear(keys[0], state_size, MID_1_SIZE)
    w2a, b2a = linear(keys[1], MID_1_SIZE, MID_2_SIZE)
    w3a, b3a = linear(keys[2], MID_2_SIZE, action_size)
    w1s, b1s = linear(keys[3], state_size, MID_1_SIZE)
    w2s, b2s = linear(keys[4], MID_1_SIZE, MID_2_SIZE)
    w3s, b3s = linear(keys[5], MID_2_SIZE, 1)
    return (w1a, b1a, w2a, b2a, w3a, b3a,
            w1s, b1s, w2s, b2s, w3s, b3s)


def pack_params(raw, action_size, dtype=jnp.float32):
    """Fuse the two streams (concat layer 1, block-diagonal layers 2/3) and
    zero-pad every layer to full 128-lane width.  Weights may be bf16 on any
    TPU generation; biases stay f32 (added after the f32-accumulated dot)."""
    (w1a, b1a, w2a, b2a, w3a, b3a,
     w1s, b1s, w2s, b2s, w3s, b3s) = raw
    A = int(action_size)
    W3 = max(H1, _round_up(A + 1, 128))              # layer-3 lane width

    # Layer 1: (S, 128)
    w1 = jnp.concatenate([w1a, w1s], axis=1).astype(dtype)
    b1 = jnp.concatenate([b1a, b1s], axis=1).astype(jnp.float32)

    # Layer 2: (128, 128), block diagonal in the first 64 output lanes.
    w2 = jnp.zeros((H1, H1), jnp.float32)
    w2 = w2.at[:MID_1_SIZE, :MID_2_SIZE].set(w2a)
    w2 = w2.at[MID_1_SIZE:, MID_2_SIZE:H2].set(w2s)
    w2 = w2.astype(dtype)
    b2 = jnp.zeros((1, H1), jnp.float32)
    b2 = b2.at[:, :MID_2_SIZE].set(b2a)
    b2 = b2.at[:, MID_2_SIZE:H2].set(b2s)

    # Layer 3: (128, W3): rows 0:32 -> lanes 0:A (adv), rows 32:64 -> lane A (val).
    w3 = jnp.zeros((H1, W3), jnp.float32)
    w3 = w3.at[:MID_2_SIZE, :A].set(w3a)
    w3 = w3.at[MID_2_SIZE:H2, A:A + 1].set(w3s)
    w3 = w3.astype(dtype)
    b3 = jnp.zeros((1, W3), jnp.float32)
    b3 = b3.at[:, :A].set(b3a)
    b3 = b3.at[:, A:A + 1].set(b3s)

    return (w1, w2, w3, b1, b2, b3)


# ---------------------------------------------------------------------------
# Forward wrapper
# ---------------------------------------------------------------------------
def qnetwork_forward(x, params, action_size, *, tile_batch=4096):
    """out = val + adv - mean(adv)  (global mean, exactly as torch.mean(adv))."""
    w1, w2, w3, b1, b2, b3 = params
    B, S = x.shape
    A = int(action_size)

    # Batch tile: multiple of 8 sublanes, no larger than needed for B.
    TB = max(8, min(_round_up(int(tile_batch), 8), _round_up(B, 8)))
    NT = pl.cdiv(B, TB)

    y = pl.pallas_call(
        functools.partial(_fwd_kernel, A=A),
        grid=(NT,),
        in_specs=[
            pl.BlockSpec((TB, S), lambda i: (i, 0)),     # x: pipelined per tile
            pl.BlockSpec(w1.shape, lambda i: (0, 0)),    # weights/biases: DMA'd once,
            pl.BlockSpec(w2.shape, lambda i: (0, 0)),    # VMEM-resident for all tiles
            pl.BlockSpec(w3.shape, lambda i: (0, 0)),
            pl.BlockSpec(b1.shape, lambda i: (0, 0)),
            pl.BlockSpec(b2.shape, lambda i: (0, 0)),
            pl.BlockSpec(b3.shape, lambda i: (0, 0)),
        ],
        out_specs=pl.BlockSpec((TB, A + 1), lambda i: (i, 0)),
        out_shape=jax.ShapeDtypeStruct((B, A + 1), jnp.float32),
        compiler_params=pltpu.CompilerParams(
            dimension_semantics=("parallel",),           # tiles independent -> megacore
            vmem_limit_bytes=32 * 1024 * 1024),
    )(x, w1, w2, w3, b1, b2, b3)

    # Tiny XLA epilogue for the GLOBAL torch.mean(adv): sum one lane of y,
    # broadcast-subtract.  Fuses with downstream consumers; no extra kernel
    # launch and no serializing accumulator inside the Pallas grid.
    adv_mean = jnp.sum(y[:, A]) * (1.0 / float(B * A))
    return y[:, :A] - adv_mean


# ---------------------------------------------------------------------------
# Pure-JAX reference (mirrors the PyTorch module exactly)
# ---------------------------------------------------------------------------
def qnetwork_reference(x, raw):
    (w1a, b1a, w2a, b2a, w3a, b3a,
     w1s, b1s, w2s, b2s, w3s, b3s) = raw
    relu = lambda t: jnp.maximum(t, 0.0)
    adv = relu(x @ w1a + b1a)
    adv = relu(adv @ w2a + b2a)
    adv = relu(adv @ w3a + b3a)
    val = relu(x @ w1s + b1s)
    val = relu(val @ w2s + b2s)
    val = relu(val @ w3s + b3s)
    return val + adv - jnp.mean(adv)     # global mean, as in torch.mean(adv)


if __name__ == "__main__":
    state_size = 16
    action_size = 4

    key = jax.random.PRNGKey(0)
    k_params, k_x1, k_x2 = jax.random.split(key, 3)
    raw = init_params(k_params, state_size, action_size)

    # 1) f32, tiny batch (single partial tile; exercises ragged-block handling)
    params = pack_params(raw, action_size)
    x1 = jax.random.normal(k_x1, (2, state_size), dtype=jnp.float32)
    out1 = jax.block_until_ready(qnetwork_forward(x1, params, action_size))
    ref1 = qnetwork_reference(x1, raw)
    assert out1.shape == (2, action_size)
    assert jnp.allclose(out1, ref1, atol=1e-4, rtol=1e-4), (out1, ref1)

    # 2) f32, multi-tile grid with a ragged final tile (parallel batch axis)
    x2 = jax.random.normal(k_x2, (300, state_size), dtype=jnp.float32)
    out2 = jax.block_until_ready(
        qnetwork_forward(x2, params, action_size, tile_batch=128))
    ref2 = qnetwork_reference(x2, raw)
    assert out2.shape == (300, action_size)
    assert jnp.allclose(out2, ref2, atol=1e-4, rtol=1e-4), \
        float(jnp.max(jnp.abs(out2 - ref2)))

    # 3) bf16 weights (usable on v5e/v6e/v7x) with f32 x + f32 accumulation;
    #    x is NOT pre-cast in the wrapper (cast happens in-kernel).
    params16 = pack_params(raw, action_size, dtype=jnp.bfloat16)
    out3 = jax.block_until_ready(
        qnetwork_forward(x2, params16, action_size, tile_batch=128))
    assert jnp.allclose(out3, ref2, atol=5e-2, rtol=5e-2), \
        float(jnp.max(jnp.abs(out3 - ref2)))

    print("KERNEL_OK")
</pallas_src>

<mosaic_0001>
module attributes {stable_mosaic.version = 11 : i64} {
  func.func @_fwd_kernel(%arg0: i32, %arg1: memref<8x16xf32, #tpu.memory_space<vmem>>, %arg2: memref<16x128xf32, #tpu.memory_space<vmem>>, %arg3: memref<128x128xf32, #tpu.memory_space<vmem>>, %arg4: memref<128x128xf32, #tpu.memory_space<vmem>>, %arg5: memref<1x128xf32, #tpu.memory_space<vmem>>, %arg6: memref<1x128xf32, #tpu.memory_space<vmem>>, %arg7: memref<1x128xf32, #tpu.memory_space<vmem>>, %arg8: memref<8x5xf32, #tpu.memory_space<vmem>>) attributes {dimension_semantics = [#tpu.dimension_semantics<parallel>], iteration_bounds = array<i64: 1>, scalar_prefetch = 0 : i64, scratch_operands = 0 : i64, tpu.core_type = #tpu.core_type<tc>, window_params = [{transform_indices = @transform_0, window_bounds = array<i64: 8, 16>}, {pipeline_mode = #tpu.pipeline_mode<synchronous>, transform_indices = @transform_1, window_bounds = array<i64: 16, 128>}, {pipeline_mode = #tpu.pipeline_mode<synchronous>, transform_indices = @transform_2, window_bounds = array<i64: 128, 128>}, {pipeline_mode = #tpu.pipeline_mode<synchronous>, transform_indices = @transform_3, window_bounds = array<i64: 128, 128>}, {pipeline_mode = #tpu.pipeline_mode<synchronous>, transform_indices = @transform_4, window_bounds = array<i64: 1, 128>}, {pipeline_mode = #tpu.pipeline_mode<synchronous>, transform_indices = @transform_5, window_bounds = array<i64: 1, 128>}, {pipeline_mode = #tpu.pipeline_mode<synchronous>, transform_indices = @transform_6, window_bounds = array<i64: 1, 128>}, {transform_indices = @transform_7, window_bounds = array<i64: 8, 5>}]} {
    %c0 = arith.constant 0 : index
    %c0_0 = arith.constant 0 : index
    %0 = vector.load %arg1[%c0, %c0_0] : memref<8x16xf32, #tpu.memory_space<vmem>>, vector<8x16xf32>
    %c0_1 = arith.constant 0 : index
    %c0_2 = arith.constant 0 : index
    %1 = vector.load %arg2[%c0_1, %c0_2] : memref<16x128xf32, #tpu.memory_space<vmem>>, vector<16x128xf32>
    %cst = arith.constant dense<0.000000e+00> : vector<8x128xf32>
    %2 = tpu.matmul %0, %1, %cst {dimension_numbers = #tpu.dot_dimension_numbers<[1], [0], [0], [1], [0, 0, 1, 1], [], []>} : vector<8x16xf32>, vector<16x128xf32>, vector<8x128xf32> -> vector<8x128xf32>
    %c0_3 = arith.constant 0 : index
    %c0_4 = arith.constant 0 : index
    %3 = vector.load %arg5[%c0_3, %c0_4] : memref<1x128xf32, #tpu.memory_space<vmem>>, vector<1x128xf32>
    %4 = vector.broadcast %3 : vector<1x128xf32> to vector<8x128xf32>
    %5 = arith.addf %2, %4 : vector<8x128xf32>
    %cst_5 = arith.constant 0.000000e+00 : f32
    %6 = vector.broadcast %cst_5 : f32 to vector<8x128xf32>
    %7 = arith.maximumf %5, %6 : vector<8x128xf32>
    %c0_6 = arith.constant 0 : index
    %c0_7 = arith.constant 0 : index
    %8 = vector.load %arg3[%c0_6, %c0_7] : memref<128x128xf32, #tpu.memory_space<vmem>>, vector<128x128xf32>
    %cst_8 = arith.constant dense<0.000000e+00> : vector<8x128xf32>
    %9 = tpu.matmul %7, %8, %cst_8 {dimension_numbers = #tpu.dot_dimension_numbers<[1], [0], [0], [1], [0, 0, 1, 1], [], []>} : vector<8x128xf32>, vector<128x128xf32>, vector<8x128xf32> -> vector<8x128xf32>
    %c0_9 = arith.constant 0 : index
    %c0_10 = arith.constant 0 : index
    %10 = vector.load %arg6[%c0_9, %c0_10] : memref<1x128xf32, #tpu.memory_space<vmem>>, vector<1x128xf32>
    %11 = vector.broadcast %10 : vector<1x128xf32> to vector<8x128xf32>
    %12 = arith.addf %9, %11 : vector<8x128xf32>
    %cst_11 = arith.constant 0.000000e+00 : f32
    %13 = vector.broadcast %cst_11 : f32 to vector<8x128xf32>
    %14 = arith.maximumf %12, %13 : vector<8x128xf32>
    %c0_12 = arith.constant 0 : index
    %c0_13 = arith.constant 0 : index
    %15 = vector.load %arg4[%c0_12, %c0_13] : memref<128x128xf32, #tpu.memory_space<vmem>>, vector<128x128xf32>
    %cst_14 = arith.constant dense<0.000000e+00> : vector<8x128xf32>
    %16 = tpu.matmul %14, %15, %cst_14 {dimension_numbers = #tpu.dot_dimension_numbers<[1], [0], [0], [1], [0, 0, 1, 1], [], []>} : vector<8x128xf32>, vector<128x128xf32>, vector<8x128xf32> -> vector<8x128xf32>
    %c0_15 = arith.constant 0 : index
    %c0_16 = arith.constant 0 : index
    %17 = vector.load %arg7[%c0_15, %c0_16] : memref<1x128xf32, #tpu.memory_space<vmem>>, vector<1x128xf32>
    %18 = vector.broadcast %17 : vector<1x128xf32> to vector<8x128xf32>
    %19 = arith.addf %16, %18 : vector<8x128xf32>
    %cst_17 = arith.constant 0.000000e+00 : f32
    %20 = vector.broadcast %cst_17 : f32 to vector<8x128xf32>
    %21 = arith.maximumf %19, %20 : vector<8x128xf32>
    %22 = vector.extract_strided_slice %21 {offsets = [0, 0], sizes = [8, 4], strides = [1, 1]} : vector<8x128xf32> to vector<8x4xf32>
    %23 = vector.extract_strided_slice %21 {offsets = [0, 4], sizes = [8, 1], strides = [1, 1]} : vector<8x128xf32> to vector<8x1xf32>
    %24 = vector.broadcast %23 : vector<8x1xf32> to vector<8x4xf32>
    %25 = arith.addf %24, %22 : vector<8x4xf32>
    %c0_18 = arith.constant 0 : index
    %c0_19 = arith.constant 0 : index
    %26 = vector.load %arg8[%c0_18, %c0_19] : memref<8x5xf32, #tpu.memory_space<vmem>>, vector<8x4xf32>
    tpu.vector_store %arg8[%c0_18, %c0_19], %25 {strides = array<i32>} : memref<8x5xf32, #tpu.memory_space<vmem>>, vector<8x4xf32>,
    %cst_20 = arith.constant dense<0.000000e+00> : vector<8xf32>
    %27 = vector.multi_reduction <add>, %22, %cst_20 [1] : vector<8x4xf32> to vector<8xf32>
    %28 = vector.shape_cast %27 : vector<8xf32> to vector<8x1xf32>
    %c0_21 = arith.constant 0 : index
    %c4 = arith.constant 4 : index
    %29 = vector.load %arg8[%c0_21, %c4] : memref<8x5xf32, #tpu.memory_space<vmem>>, vector<8x1xf32>
    tpu.vector_store %arg8[%c0_21, %c4], %28 {strides = array<i32>} : memref<8x5xf32, #tpu.memory_space<vmem>>, vector<8x1xf32>,
    return
  }
  func.func @transform_0(%arg0: i32) -> (i32, i32) {
    %c0_i32 = arith.constant 0 : i32
    %c0_i32_0 = arith.constant 0 : i32
    return %arg0, %c0_i32 : i32, i32
  }
  func.func @transform_1(%arg0: i32) -> (i32, i32) {
    %c0_i32 = arith.constant 0 : i32
    %c0_i32_0 = arith.constant 0 : i32
    %c0_i32_1 = arith.constant 0 : i32
    return %c0_i32, %c0_i32_0 : i32, i32
  }
  func.func @transform_2(%arg0: i32) -> (i32, i32) {
    %c0_i32 = arith.constant 0 : i32
    %c0_i32_0 = arith.constant 0 : i32
    %c0_i32_1 = arith.constant 0 : i32
    return %c0_i32, %c0_i32_0 : i32, i32
  }
  func.func @transform_3(%arg0: i32) -> (i32, i32) {
    %c0_i32 = arith.constant 0 : i32
    %c0_i32_0 = arith.constant 0 : i32
    %c0_i32_1 = arith.constant 0 : i32
    return %c0_i32, %c0_i32_0 : i32, i32
  }
  func.func @transform_4(%arg0: i32) -> (i32, i32) {
    %c0_i32 = arith.constant 0 : i32
    %c0_i32_0 = arith.constant 0 : i32
    %c0_i32_1 = arith.constant 0 : i32
    return %c0_i32, %c0_i32_0 : i32, i32
  }
  func.func @transform_5(%arg0: i32) -> (i32, i32) {
    %c0_i32 = arith.constant 0 : i32
    %c0_i32_0 = arith.constant 0 : i32
    %c0_i32_1 = arith.constant 0 : i32
    return %c0_i32, %c0_i32_0 : i32, i32
  }
  func.func @transform_6(%arg0: i32) -> (i32, i32) {
    %c0_i32 = arith.constant 0 : i32
    %c0_i32_0 = arith.constant 0 : i32
    %c0_i32_1 = arith.constant 0 : i32
    return %c0_i32, %c0_i32_0 : i32, i32
  }
  func.func @transform_7(%arg0: i32) -> (i32, i32) {
    %c0_i32 = arith.constant 0 : i32
    %c0_i32_0 = arith.constant 0 : i32
    return %arg0, %c0_i32 : i32, i32
  }
}

</mosaic_0001>

<bundles_post_ra>
// kernel: tpu_custom_call.1
= control target key start
LH: loop header
LB: loop body
LE: loop exit
PB: predicated region body
PF: predicated region fallthrough
CT: control target
= control target key end

     0   :  { %12 = vsyncpa [#allocation3], 0  ;;  %s461_s0 = inlined_call_operand.hbm [shape: f32[2,16], index: 0, kind: input, shape index: {}]   ;;  %s462_s1 = inlined_call_operand.hbm [shape: f32[16,128], index: 1, kind: input, shape index: {}]   ;;  %s463_s2 = inlined_call_operand.hbm [shape: f32[128,128], index: 2, kind: input, shape index: {}]   ;;  %s464_s3 = inlined_call_operand.hbm [shape: f32[128,128], index: 3, kind: input, shape index: {}]   ;;  %s465_s4 = inlined_call_operand.vmem [shape: f32[1,128], index: 4, kind: input, shape index: {}]   ;;  %s466_s5 = inlined_call_operand.vmem [shape: f32[1,128], index: 5, kind: input, shape index: {}]   ;;  %s467_s6 = inlined_call_operand.vmem [shape: f32[1,128], index: 6, kind: input, shape index: {}]   ;;  %s468_s7 = inlined_call_operand.hbm [shape: f32[2,5], index: 7, kind: output, shape index: {}]  }
   0x1   :  { %13 = vsyncpa [#allocation6], 0 }
   0x2   :  { %14 = vsyncpa [#allocation9], 0 }
   0x3   :  { %15 = vsyncpa [#allocation4], 0  ;;  %s33_s26 = sshll.u32 %s462_s1, 4  ;;  %s34_s26 = int_to_ptr.hbm [resolvable:$true] %s33_s26 }
   0x4   :  { %19 = vsyncadd [#allocation3], 96  ;;  %s381_s27 = smov [#allocation5]   ;;  %s20_s8 = sshll.u32 %s461_s0, 4  ;;  %s21_s8 = int_to_ptr.hbm [resolvable:$true] %s20_s8 }
   0x5   :  { %s35_s28 = sshll.u32 %s381_s27, 4  ;;  %s382_s9 = smov 128   ;;  %s36_s28 = int_to_ptr.vmem [resolvable:$true] %s35_s28 }
   0x6   :  { %s383_s10 = smov 8   ;;  %s384_s11 = smov [#allocation2]  }
   0x7   :  { %41 = dma.hbm_to_vmem [thread:$0]  %s34_s26, 256, %s36_s28, [#allocation6], %s382_s9, %s382_s9, %s383_s10  }
   0x8   :  { %s22_s12 = sshll.u32 %s384_s11, 4  ;;  %s385_s13 = smov 32   ;;  %s23_s12 = int_to_ptr.vmem [resolvable:$true] %s22_s12 }
   0x9   :  { %s386_s14 = smov 2   ;;  %s46_s16 = sshll.u32 %s463_s2, 4  ;;  %s47_s16 = int_to_ptr.hbm [resolvable:$true] %s46_s16 }
   0xa   :  { %28 = dma.hbm_to_vmem [thread:$0]  %s21_s8, 32, %s23_s12, [#allocation3], %s385_s13, %s385_s13, %s386_s14  }
   0xb   :  { %s387_s17 = smov [#allocation7]   ;;  %s59_s20 = sshll.u32 %s464_s3, 4  ;;  %s60_s20 = int_to_ptr.hbm [resolvable:$true] %s59_s20 }
   0xc   :  { %s48_s0 = sshll.u32 %s387_s17, 4  ;;  %s388_s21 = smov [#allocation8]   ;;  %s49_s0 = int_to_ptr.vmem [resolvable:$true] %s48_s0 }
   0xd   :  { %54 = dma.hbm_to_vmem [thread:$0]  %s47_s16, 2048, %s49_s0, [#allocation6], %s382_s9, %s382_s9, %s383_s10  }
   0xe   :  { %s61_s22 = sshll.u32 %s388_s21, 4  ;;  %s62_s22 = int_to_ptr.vmem [resolvable:$true] %s61_s22 }
   0xf   :  { %67 = dma.hbm_to_vmem [thread:$0]  %s60_s20, 2048, %s62_s22, [#allocation9], %s382_s9, %s382_s9, %s383_s10  }
  0x10   :  { %373 = dma.done.wait [#allocation3], 128  }
  0x11   :  { %374 = vsyncadd [#allocation3], 4294967168 }
  0x12   :  { %375 = dma.done.wait [#allocation6], 2304  }
  0x13   :  { %376 = vsyncadd [#allocation6], 4294964992 }
  0x14   :  { %377 = dma.done.wait [#allocation9], 2048  }
  0x15   :  { %378 = vsyncadd [#allocation9], 4294965248  ;;  %v92_v0 = vld [vmem:[#allocation5 + $0x8] sm:$0xff]  ;;  %v91_v1 = vld [vmem:[#allocation5] sm:$0xff]  ;;  %vm97_vm0 = vcmask 130048   ;;  %v389_v43 = vmov 4  }
  0x16   :  { %115 = vmatpush.msra.mxu0 %v92_v0  ;;  %v90_v2 = vld [vmem:[#allocation2] sm:$0xff]  ;;  %v137_v3 = vld [vmem:[#allocation7 + $0x78] sm:$0xff]  ;;  %v136_v4 = vld [vmem:[#allocation7 + $0x70] sm:$0xff]  ;;  %249 = vset.pattern.permute.xlu0 %v389_v43  ;;  %vm210_vm1 = vcmask 31744   ;;  %vm215_vm2 = vcmask 39968  }
  0x17   :  { %142 = vmatpush.msra.mxu1 %v137_v3  ;;  %v135_v5 = vld [vmem:[#allocation7 + $0x68] sm:$0xff]  ;;  %v134_v6 = vld [vmem:[#allocation7 + $0x60] sm:$0xff]  ;;  %v133_v7 = vld [vmem:[#allocation7 + $0x58] sm:$0xff] }
  0x18   :  { %116 = vmatpush.msra.mxu0 %v91_v1  ;;  %v132_v8 = vld [vmem:[#allocation7 + $0x50] sm:$0xff]  ;;  %v131_v9 = vld [vmem:[#allocation7 + $0x48] sm:$0xff]  ;;  %v130_v10 = vld [vmem:[#allocation7 + $0x40] sm:$0xff] }
  0x19   :  { %238 = vmatmul.msk.f32.vlgmr.msra.gmra.mxu0 %vm97_vm0, %v90_v2  ;;  %143 = vmatpush.msra.mxu1 %v136_v4  ;;  %v129_v11 = vld [vmem:[#allocation7 + $0x38] sm:$0xff]  ;;  %v128_v12 = vld [vmem:[#allocation7 + $0x30] sm:$0xff]  ;;  %v127_v13 = vld [vmem:[#allocation7 + $0x28] sm:$0xff] }
  0x1a   :  { %v126_v14 = vld [vmem:[#allocation7 + $0x20] sm:$0xff]  ;;  %v125_v15 = vld [vmem:[#allocation7 + $0x18] sm:$0xff]  ;;  %v124_v16 = vld [vmem:[#allocation7 + $0x10] sm:$0xff] }
  0x1b   :  { %144 = vmatpush.msra.mxu1 %v135_v5  ;;  %v123_v17 = vld [vmem:[#allocation7 + $0x8] sm:$0xff]  ;;  %v122_v18 = vld [vmem:[#allocation7] sm:$0xff]  ;;  %v178_v19 = vld [vmem:[#allocation8 + $0x78] sm:$0xff] }
  0x1c   :  { %v177_v20 = vld [vmem:[#allocation8 + $0x70] sm:$0xff]  ;;  %183 = vmatpush.msra.mxu2 %v178_v19  ;;  %v176_v21 = vld [vmem:[#allocation8 + $0x68] sm:$0xff]  ;;  %v175_v22 = vld [vmem:[#allocation8 + $0x60] sm:$0xff] }
  0x1d   :  { %145 = vmatpush.msra.mxu1 %v134_v6  ;;  %v174_v23 = vld [vmem:[#allocation8 + $0x58] sm:$0xff]  ;;  %v173_v24 = vld [vmem:[#allocation8 + $0x50] sm:$0xff]  ;;  %v172_v25 = vld [vmem:[#allocation8 + $0x48] sm:$0xff] }
  0x1e   :  { %184 = vmatpush.msra.mxu2 %v177_v20  ;;  %v171_v26 = vld [vmem:[#allocation8 + $0x40] sm:$0xff]  ;;  %v170_v27 = vld [vmem:[#allocation8 + $0x38] sm:$0xff]  ;;  %v169_v28 = vld [vmem:[#allocation8 + $0x30] sm:$0xff] }
  0x1f   :  { %146 = vmatpush.msra.mxu1 %v133_v7  ;;  %v168_v29 = vld [vmem:[#allocation8 + $0x28] sm:$0xff]  ;;  %v167_v30 = vld [vmem:[#allocation8 + $0x20] sm:$0xff]  ;;  %v166_v31 = vld [vmem:[#allocation8 + $0x18] sm:$0xff] }
  0x20   :  { %185 = vmatpush.msra.mxu2 %v176_v21  ;;  %v250_v32 = vld [vmem:[%s465_s4] ss:$0 sm:$0xff]  ;;  %v165_v36 = vld [vmem:[#allocation8 + $0x10] sm:$0xff]  ;;  %v163_v38 = vld [vmem:[#allocation8] sm:$0xff] }
  0x21   :  { %147 = vmatpush.msra.mxu1 %v132_v8  ;;  %v164_v37 = vld [vmem:[#allocation8 + $0x8] sm:$0xff] }
  0x22   :  { %186 = vmatpush.msra.mxu2 %v175_v22  ;;  %v251_v39 = vld [vmem:[%s466_s5] ss:$0 sm:$0xff] }
  0x23   :  { %148 = vmatpush.msra.mxu1 %v131_v9  ;;  %v252_v44 = vld [vmem:[%s467_s6] ss:$0 sm:$0xff] }
  0x24   :  { %187 = vmatpush.msra.mxu2 %v174_v23 }
  0x25   :  { %149 = vmatpush.msra.mxu1 %v130_v10 }
  0x26   :  { %188 = vmatpush.msra.mxu2 %v173_v24 }
  0x27   :  { %150 = vmatpush.msra.mxu1 %v129_v11 }
  0x28   :  { %189 = vmatpush.msra.mxu2 %v172_v25 }
  0x29   :  { %151 = vmatpush.msra.mxu1 %v128_v12 }
  0x2a   :  { %190 = vmatpush.msra.mxu2 %v171_v26 }
  0x2b   :  { %152 = vmatpush.msra.mxu1 %v127_v13 }
  0x2c   :  { %191 = vmatpush.msra.mxu2 %v170_v27 }
  0x2d   :  { %153 = vmatpush.msra.mxu1 %v126_v14 }
  0x2e   :  { %192 = vmatpush.msra.mxu2 %v169_v28 }
  0x2f   :  { %154 = vmatpush.msra.mxu1 %v125_v15 }
  0x30   :  { %193 = vmatpush.msra.mxu2 %v168_v29 }
  0x31   :  { %155 = vmatpush.msra.mxu1 %v124_v16 }
  0x32   :  { %194 = vmatpush.msra.mxu2 %v167_v30 }
  0x33   :  { %156 = vmatpush.msra.mxu1 %v123_v17 }
  0x34   :  { %195 = vmatpush.msra.mxu2 %v166_v31 }
  0x35   :  { %157 = vmatpush.msra.mxu1 %v122_v18 }
  0x36   :  { %196 = vmatpush.msra.mxu2 %v165_v36 }
  0x38   :  { %197 = vmatpush.msra.mxu2 %v164_v37 }
  0x3a   :  { %198 = vmatpush.msra.mxu2 %v163_v38 }
  0x96   :  { %v118_v33 = vpop.f32.mrf.mxu0 }
  0x97   :  { %v119_v34 = vadd.f32 %v250_v32, %v118_v33 }
  0x99   :  { %v121_v35 = vmax.f32 %v119_v34, 0.0 }
  0x9b   :  { %158 = vmatmul.f32.vlgmr.msra.gmra.mxu1 %v121_v35 }
 0x118   :  { %v159_v40 = vpop.f32.mrf.mxu1 }
 0x119   :  { %v160_v41 = vadd.f32 %v251_v39, %v159_v40 }
 0x11b   :  { %v162_v42 = vmax.f32 %v160_v41, 0.0 }
 0x11d   :  { %199 = vmatmul.f32.vlgmr.msra.gmra.mxu2 %v162_v42 }
 0x1a0   :  { %v200_v45 = vpop.f32.mrf.mxu2 }
 0x1a1   :  { %v201_v46 = vadd.f32 %v252_v44, %v200_v45 }
 0x1a3   :  { %v203_v47 = vmax.f32 %v201_v46, 0.0 }
 0x1a5   :  { %206 = vperm.xlu0 %249, %v203_v47   ;;  %v212_v48 = vsel %vm210_vm1, %v203_v47, 0.0 }
 0x1cf   :  { %213 = vadd.xlane.f32.xlu0 %v212_v48 }
 0x217   :  { %v207_v49 = vpop.permute.xlu0 %206 }
 0x218   :  { %v209_v50 = vadd.f32 %v207_v49, %v203_v47 }
 0x21a   :  { %211 = vst.msk [vmem:[#allocation10] sm:$0xff] %vm210_vm1, %v209_v50 }
 0x242   :  { %v214_v51 = vpop.xlane.xlu0 %213 }
 0x243   :  { %216 = vst.msk [vmem:[#allocation10] sm:$0xff] %vm215_vm2, %v214_v51 }
 0x244   :  { %220 = vsyncadd [#allocation4], 96  ;;  %s223_s27 = sshll.u32 %s468_s7, 4  ;;  %s390_s28 = smov [#allocation10]   ;;  %s224_s27 = int_to_ptr.hbm [resolvable:$true] %s223_s27 }
 0x245   :  { %s221_s6 = sshll.u32 %s390_s28, 4  ;;  %s222_s6 = int_to_ptr.vmem [resolvable:$true] %s221_s6 }
 0x246   :  { %229 = dma.vmem_to_hbm [thread:$0]  %s222_s6, 32, %s224_s27, [#allocation4], %s385_s13, %s385_s13, %s386_s14  }
 0x247   :  { %379 = dma.done.wait [#allocation4], 128  }
 0x248   :  { %380 = vsyncadd [#allocation4], 4294967168 }
 0x249   :  { %234 = vsyncpa [#allocation3], 1 }
 0x24a   :  { %235 = vsyncpa [#allocation6], 1 }
 0x24b   :  { %236 = vsyncpa [#allocation9], 1 }
 0x24c   :  { %237 = vsyncpa [#allocation4], 1 }

</bundles_post_ra>
